<compile_context>
chip_gen: v5e
topology: v5e:2x2
jax: 0.10.0
libtpu: 0.0.40
codegen_flags: <defaults>
</compile_context>

<pallas_src>
import functools

import numpy as np
import jax
import jax.numpy as jnp
from jax.experimental import pallas as pl
from jax.experimental.pallas import tpu as pltpu


def _transition_kernel(x_ref, w_ref, scale_ref, bias_ref, o_ref, *, H, W,
                       matmul_dtype):
    # x_ref:     (1, Cin, H*W)    one NCHW image, spatial flattened (lane-dense)
    # w_ref:     (Cout, Cin)      1x1 conv weight, channel-major (matmul dtype)
    # scale_ref: (Cin, 1)  f32    folded BN scale
    # bias_ref:  (Cin, 1)  f32    folded BN bias
    # o_ref:     (1, Cout, Ho*Wo) NCHW output tile, spatial flattened
    cin = x_ref.shape[1]
    ho, wo = H // 2, W // 2

    # Folded BN + ReLU in channel-major layout (per-channel scale/bias splat
    # along lanes), then cast to the matmul dtype BEFORE the big transpose so
    # the XLU moves narrow data when matmul_dtype is bf16.
    x = x_ref[0].astype(jnp.float32)                               # (Cin, H*W)
    y = jnp.maximum(x * scale_ref[...] + bias_ref[...], 0.0)       # f32 VPU
    y = y.astype(matmul_dtype)

    # Channel-minor for pooling + matmul: single in-VMEM 2-D transpose (XLU).
    yt = y.T                                                       # (H*W, Cin)

    # 2x2 average pool BEFORE the 1x1 conv (both linear over the pooled window
    # => pool(conv(y)) == conv(pool(y))); accumulate the 4-tap sum in f32.
    # TODO(synk): for stages where W is not a multiple of 8 these reshapes may
    # introduce sublane relayouts; restructure as strided sublane adds there.
    p = yt.astype(jnp.float32).reshape(ho, 2, W, cin).sum(axis=1)  # (Ho, W, Cin)
    p = p.reshape(ho, wo, 2, cin).sum(axis=2) * 0.25               # (Ho, Wo, Cin)
    yb = p.reshape(ho * wo, cin).astype(matmul_dtype)              # (S, Cin)

    # 1x1 conv == channel matmul on the MXU, computed channel-major directly:
    # (Cout, Cin) x (S, Cin) contracted over Cin -> (Cout, S). No output-side
    # transpose needed before the store.
    z = jax.lax.dot_general(
        w_ref[...], yb,
        dimension_numbers=(((1,), (1,)), ((), ())),
        preferred_element_type=jnp.float32)                        # (Cout, S)

    o_ref[0] = z.astype(o_ref.dtype)


def transition_block(x_nchw, conv_w, gamma, beta, running_mean, running_var,
                     eps=1e-5, droprate=0.0, matmul_dtype=jnp.float32):
    """x_nchw: (N, Cin, H, W); conv_w: (Cout, Cin, 1, 1) -> (N, Cout, H//2, W//2).

    matmul_dtype: set to jnp.bfloat16 on real TPU hardware to feed the MXU
    natively (f32 default kept so the CPU/interpret test path also runs).
    """
    # TODO(synk): training-mode BN (batch statistics) and droprate > 0
    # (dropout) are not implemented; module default droprate=0.0 is a no-op.
    N, Cin, H, W = x_nchw.shape
    Cout = conv_w.shape[0]
    assert H % 2 == 0 and W % 2 == 0
    Ho, Wo = H // 2, W // 2

    # Fold BN (eval mode, running statistics) into per-channel scale / bias,
    # shaped (Cin, 1) for channel-major broadcast inside the kernel.
    scale = (gamma / jnp.sqrt(running_var + eps)).astype(jnp.float32)
    bias = beta.astype(jnp.float32) - running_mean.astype(jnp.float32) * scale
    scale = scale.reshape(Cin, 1)
    bias = bias.reshape(Cin, 1)

    # 1x1 conv weight kept channel-major (Cout, Cin): the kernel contracts Cin
    # via dot_general, so no output-side transpose is needed.
    w = conv_w[:, :, 0, 0].astype(matmul_dtype)

    # Free reshapes (contiguous minor-dim merge): no HBM transpose passes.
    x_flat = x_nchw.reshape(N, Cin, H * W)

    # Explicit VMEM budget from actual block sizes (double-buffered I/O plus
    # generous headroom for in-kernel temporaries), clamped to v7x's 64 MiB.
    itemsize = np.dtype(x_nchw.dtype).itemsize
    in_block = Cin * H * W * itemsize
    out_block = Cout * Ho * Wo * itemsize
    const = Cout * Cin * np.dtype(matmul_dtype).itemsize + 2 * Cin * 4
    vmem_limit = int(min(64 * 2**20,
                         max(32 * 2**20,
                             8 * in_block + 4 * out_block + 4 * const)))

    kernel = functools.partial(_transition_kernel, H=H, W=W,
                               matmul_dtype=matmul_dtype)
    out_flat = pl.pallas_call(
        kernel,
        out_shape=jax.ShapeDtypeStruct((N, Cout, Ho * Wo), x_nchw.dtype),
        grid_spec=pltpu.PrefetchScalarGridSpec(
            num_scalar_prefetch=0,
            grid=(N,),
            in_specs=[
                pl.BlockSpec((1, Cin, H * W), lambda n: (n, 0, 0)),
                pl.BlockSpec((Cout, Cin), lambda n: (0, 0)),
                pl.BlockSpec((Cin, 1), lambda n: (0, 0)),
                pl.BlockSpec((Cin, 1), lambda n: (0, 0)),
            ],
            out_specs=pl.BlockSpec((1, Cout, Ho * Wo), lambda n: (n, 0, 0)),
        ),
        compiler_params=pltpu.CompilerParams(
            dimension_semantics=("parallel",),
            vmem_limit_bytes=vmem_limit),
    )(x_flat, w, scale, bias)

    return out_flat.reshape(N, Cout, Ho, Wo)


def _reference(x_nchw, conv_w, gamma, beta, running_mean, running_var, eps=1e-5):
    """Pure-JAX f32 reference mirroring the PyTorch forward (eval, droprate=0)."""
    inv = gamma / jnp.sqrt(running_var + eps)
    xb = (x_nchw - running_mean[None, :, None, None]) * inv[None, :, None, None] \
         + beta[None, :, None, None]
    xr = jnp.maximum(xb, 0.0)
    z = jnp.einsum('nchw,oc->nohw', xr, conv_w[:, :, 0, 0])
    N, Co, H, W = z.shape
    z = z.reshape(N, Co, H // 2, 2, W // 2, 2)
    return z.mean(axis=(3, 5))


if __name__ == "__main__":
    key = jax.random.PRNGKey(0)
    k_x, k_w, k_g, k_b, k_m, k_v = jax.random.split(key, 6)

    N, Cin, Cout, H, W = 2, 16, 8, 16, 16
    # dropRate = 0.0 (module default) -> dropout is a no-op.

    x = jax.random.normal(k_x, (N, Cin, H, W), dtype=jnp.float32)
    conv_w = jax.random.normal(k_w, (Cout, Cin, 1, 1), dtype=jnp.float32) * 0.1
    gamma = jax.random.uniform(k_g, (Cin,), minval=0.5, maxval=1.5)
    beta = jax.random.normal(k_b, (Cin,)) * 0.1
    running_mean = jax.random.normal(k_m, (Cin,)) * 0.1
    running_var = jax.random.uniform(k_v, (Cin,), minval=0.5, maxval=1.5)

    ref = _reference(x, conv_w, gamma, beta, running_mean, running_var)

    out = transition_block(x, conv_w, gamma, beta, running_mean, running_var)
    out = jax.block_until_ready(out)
    assert out.shape == (N, Cout, H // 2, W // 2), out.shape
    assert jnp.allclose(out, ref, atol=1e-4, rtol=1e-4), "mismatch vs reference"

    print("KERNEL_OK")
</pallas_src>

<mosaic_0001>
module attributes {stable_mosaic.version = 11 : i64} {
  func.func @_transition_kernel(%arg0: i32, %arg1: memref<1x16x256xf32, #tpu.memory_space<vmem>>, %arg2: memref<8x16xf32, #tpu.memory_space<vmem>>, %arg3: memref<16x1xf32, #tpu.memory_space<vmem>>, %arg4: memref<16x1xf32, #tpu.memory_space<vmem>>, %arg5: memref<1x8x64xf32, #tpu.memory_space<vmem>>) attributes {dimension_semantics = [#tpu.dimension_semantics<parallel>], iteration_bounds = array<i64: 2>, scalar_prefetch = 0 : i64, scratch_operands = 0 : i64, tpu.core_type = #tpu.core_type<tc>, window_params = [{transform_indices = @transform_0, window_bounds = array<i64: 1, 16, 256>}, {pipeline_mode = #tpu.pipeline_mode<synchronous>, transform_indices = @transform_1, window_bounds = array<i64: 8, 16>}, {pipeline_mode = #tpu.pipeline_mode<synchronous>, transform_indices = @transform_2, window_bounds = array<i64: 16, 1>}, {pipeline_mode = #tpu.pipeline_mode<synchronous>, transform_indices = @transform_3, window_bounds = array<i64: 16, 1>}, {transform_indices = @transform_4, window_bounds = array<i64: 1, 8, 64>}]} {
    %c0 = arith.constant 0 : index
    %c0_0 = arith.constant 0 : index
    %c0_1 = arith.constant 0 : index
    %0 = vector.load %arg1[%c0, %c0_0, %c0_1] : memref<1x16x256xf32, #tpu.memory_space<vmem>>, vector<1x16x256xf32>
    %1 = vector.shape_cast %0 : vector<1x16x256xf32> to vector<16x256xf32>
    %c0_2 = arith.constant 0 : index
    %c0_3 = arith.constant 0 : index
    %2 = vector.load %arg3[%c0_2, %c0_3] : memref<16x1xf32, #tpu.memory_space<vmem>>, vector<16x1xf32>
    %3 = vector.broadcast %2 : vector<16x1xf32> to vector<16x256xf32>
    %4 = arith.mulf %1, %3 : vector<16x256xf32>
    %c0_4 = arith.constant 0 : index
    %c0_5 = arith.constant 0 : index
    %5 = vector.load %arg4[%c0_4, %c0_5] : memref<16x1xf32, #tpu.memory_space<vmem>>, vector<16x1xf32>
    %6 = vector.broadcast %5 : vector<16x1xf32> to vector<16x256xf32>
    %7 = arith.addf %4, %6 : vector<16x256xf32>
    %cst = arith.constant 0.000000e+00 : f32
    %8 = vector.broadcast %cst : f32 to vector<16x256xf32>
    %9 = arith.maximumf %7, %8 : vector<16x256xf32>
    %10 = tpu.transpose %9, [1, 0] : vector<16x256xf32> -> vector<256x16xf32>
    %11 = vector.shape_cast %10 : vector<256x16xf32> to vector<8x2x16x16xf32>
    %cst_6 = arith.constant dense<0.000000e+00> : vector<8x16x16xf32>
    %12 = vector.multi_reduction <add>, %11, %cst_6 [1] : vector<8x2x16x16xf32> to vector<8x16x16xf32>
    %13 = vector.shape_cast %12 : vector<8x16x16xf32> to vector<8x8x2x16xf32>
    %cst_7 = arith.constant dense<0.000000e+00> : vector<8x8x16xf32>
    %14 = vector.multi_reduction <add>, %13, %cst_7 [2] : vector<8x8x2x16xf32> to vector<8x8x16xf32>
    %cst_8 = arith.constant 2.500000e-01 : f32
    %15 = vector.broadcast %cst_8 : f32 to vector<8x8x16xf32>
    %16 = arith.mulf %14, %15 : vector<8x8x16xf32>
    %17 = vector.shape_cast %16 : vector<8x8x16xf32> to vector<64x16xf32>
    %c0_9 = arith.constant 0 : index
    %c0_10 = arith.constant 0 : index
    %18 = vector.load %arg2[%c0_9, %c0_10] : memref<8x16xf32, #tpu.memory_space<vmem>>, vector<8x16xf32>
    %cst_11 = arith.constant dense<0.000000e+00> : vector<8x64xf32>
    %19 = tpu.matmul %18, %17, %cst_11 {dimension_numbers = #tpu.dot_dimension_numbers<[1], [1], [0], [0], [0, 0, 1, 0], [], []>} : vector<8x16xf32>, vector<64x16xf32>, vector<8x64xf32> -> vector<8x64xf32>
    %c0_12 = arith.constant 0 : index
    %c0_13 = arith.constant 0 : index
    %c0_14 = arith.constant 0 : index
    %20 = vector.load %arg5[%c0_12, %c0_13, %c0_14] : memref<1x8x64xf32, #tpu.memory_space<vmem>>, vector<1x8x64xf32>
    %21 = vector.shape_cast %20 : vector<1x8x64xf32> to vector<8x64xf32>
    %22 = vector.shape_cast %19 : vector<8x64xf32> to vector<1x8x64xf32>
    tpu.vector_store %arg5[%c0_12, %c0_13, %c0_14], %22 {strides = array<i32>} : memref<1x8x64xf32, #tpu.memory_space<vmem>>, vector<1x8x64xf32>,
    return
  }
  func.func @transform_0(%arg0: i32) -> (i32, i32, i32) {
    %c0_i32 = arith.constant 0 : i32
    %c0_i32_0 = arith.constant 0 : i32
    %c0_i32_1 = arith.constant 0 : i32
    return %arg0, %c0_i32, %c0_i32_0 : i32, i32, i32
  }
  func.func @transform_1(%arg0: i32) -> (i32, i32) {
    %c0_i32 = arith.constant 0 : i32
    %c0_i32_0 = arith.constant 0 : i32
    %c0_i32_1 = arith.constant 0 : i32
    return %c0_i32, %c0_i32_0 : i32, i32
  }
  func.func @transform_2(%arg0: i32) -> (i32, i32) {
    %c0_i32 = arith.constant 0 : i32
    %c0_i32_0 = arith.constant 0 : i32
    %c0_i32_1 = arith.constant 0 : i32
    return %c0_i32, %c0_i32_0 : i32, i32
  }
  func.func @transform_3(%arg0: i32) -> (i32, i32) {
    %c0_i32 = arith.constant 0 : i32
    %c0_i32_0 = arith.constant 0 : i32
    %c0_i32_1 = arith.constant 0 : i32
    return %c0_i32, %c0_i32_0 : i32, i32
  }
  func.func @transform_4(%arg0: i32) -> (i32, i32, i32) {
    %c0_i32 = arith.constant 0 : i32
    %c0_i32_0 = arith.constant 0 : i32
    %c0_i32_1 = arith.constant 0 : i32
    return %arg0, %c0_i32, %c0_i32_0 : i32, i32, i32
  }
}

</mosaic_0001>

<bundles_post_ra>
// kernel: tpu_custom_call.1
= control target key start
LH: loop header
LB: loop body
LE: loop exit
PB: predicated region body
PF: predicated region fallthrough
CT: control target
= control target key end

     0   :  { %9 = vsyncpa [#allocation3], 0  ;;  %s2087_s0 = inlined_call_operand.hbm [shape: f32[2,16,256], index: 0, kind: input, shape index: {}]   ;;  %s2088_s1 = inlined_call_operand.vmem [shape: f32[8,16], index: 1, kind: input, shape index: {}]   ;;  %s2089_s2 = inlined_call_operand.vmem [shape: f32[16,1], index: 2, kind: input, shape index: {}]   ;;  %s2090_s3 = inlined_call_operand.vmem [shape: f32[16,1], index: 3, kind: input, shape index: {}]   ;;  %s2091_s4 = inlined_call_operand.hbm [shape: f32[2,8,64], index: 4, kind: output, shape index: {}]  }
   0x1   :  { %11 = vsyncpa [#allocation3 + $0x1], 0 }
   0x2   :  { %12 = vsyncpa [#allocation4], 0 }
   0x3   :  { %14 = vsyncpa [#allocation4 + $0x1], 0  ;;  %s1452_s15 = smov 0   ;;  %s1454_s16 = smov 0  }
   0x4   :  { %s1456_s17 = smov 0   ;;  %s1458_s18 = smov 0  }
   0x5 LB: > { %s1473_s19 = sadd.s32 4294967295, %s1422_s18   ;;  %s1251_s20 = sadd.s32 4294967294, %s1422_s18   ;;  %s1422_s18 = sphi %s1458_s18, %s2181_s18   ;;  %s1418_s17 = sphi %s1456_s17, %s2180_s17   ;;  %s1414_s16 = sphi %s1454_s16, %s2179_s16   ;;  %s1410_s15 = sphi %s1452_s15, %s2178_s15  }
   0x6   : > { %s1477_s21 = sadd.s32 1, %s1422_s18   ;;  %s27_s22 = sadd.s32 1, %s1418_s17 }
   0x7   : > { %s24_s23 = ssub.s32 %s1422_s18, %s1477_s21  ;;  %p34_p0 = scmp.ne.s32.totalorder %s1418_s17, %s1414_s16 }
   0x8   : > { %p25_p1 = scmp.eq.s32.totalorder %s24_s23, 0  ;;  %p35_p2 = scmp.eq.s32.totalorder %s1422_s18, 0 }
   0x9   : > { %p40_p3 = scmp.ne.s32.totalorder %s1414_s16, %s1410_s15  ;;  %p41_p4 = scmp.eq.s32.totalorder %s1473_s19, 0 }
   0xa   : > { %s1489_s24 = scalar_select %p25_p1, %s1418_s17, %s27_s22  }
   0xb   : > { %p1491_p5 = por %p35_p2, %p34_p0  ;;  %p1495_p6 = por %p41_p4, %p40_p3 }
   0xc   : > { %p127_p7 = scmp.eq.s32.totalorder %s1473_s19, 1  ;;  %p133_p8 = scmp.eq.s32.totalorder %s1251_s20, 1 }
   0xd   : > { %p1286_p10 = scmp.lt.s32.totalorder %s1422_s18, 2  ;;  %s162_s29 = sand.u32 1, %s1418_s17  }
   0xe   : > { %p1502_p11 = por %p127_p7, %p34_p0  ;;  %p1506_p12 = por %p133_p8, %p40_p3 }
   0xf   : > { %s1273_s30 = sshll.u32 %s1422_s18, 5  ;;  %s1254_s5 = sshll.u32 %s162_s29, 5 }
  0x10   : > { %s171_s8 = scalar_lea.hbm %s2087_s0, %s1273_s30  ;;  %s166_s10 = scalar_lea.vmem [#allocation2], %s1254_s5 }
  0x11   : > { %s172_s9 = sshll.u32 %s171_s8, 4  ;;  %s174_s11 = sshll.u32 %s166_s10, 4  ;;  %s173_s9 = int_to_ptr.hbm [resolvable:$true] %s172_s9  ;;  %s175_s11 = int_to_ptr.vmem [resolvable:$true] %s174_s11 }
  0x12   : > { %p1517_p13 = pnand %p1286_p10, %p1491_p5  ;;  %p1257_p0 = scmp.ge.s32.totalorder %s1422_s18, 1 }
  0x13   : > { %p182_p1 = scmp.lt.s32.totalorder %s1422_s18, 3  ;;  %s163_s13 = scalar_lea.sflag [#allocation3], %s162_s29 }
  0x14   : > { %s1326_s14 = sshra.s32 %s173_s9, 4  ;;  %p1330_p3 = pneg %p1517_p13  ;;  %s1327_s14 = int_to_ptr.hbm [resolvable:$true] %s1326_s14 }
  0x15   : > { %s1328_s20 = scalar_lea.hbm %s1327_s14, 32  ;;  %s1333_s25 = scalar_lea.hbm %s2087_s0, 64 }
  0x16   : > { %p1329_p2 = scmp.ne.s32.totalorder %s1327_s14, %s1328_s20  ;;  %p1334_p5 = scmp.lt.s32.totalorder %s1327_s14, %s2087_s0 }
  0x17   : > { %p1335_p8 = scmp.lt.s32.totalorder %s1333_s25, %s1328_s20 }
  0x18   : > { %p1331_p4 = pnand %p1330_p3, %p1329_p2 }
  0x19   : > { %p1336_p10 = por %p1335_p8, %p1334_p5 }
  0x1a   : > { %p1332_p7 = pneg %p1331_p4 }
  0x1c   : > { %p1337_p9 = pnand %p1336_p10, %p1332_p7 }
  0x1e   : > { %1340 = shalt.err (!%p1337_p9)
}
  0x1f   : > { %s1424_s29 = smov 256   ;;  %s1425_s6 = smov 16  }
  0x20   : > { %1281 = dma.hbm_to_vmem [thread:$0]  (!%p1517_p13), %s173_s9, 512, %s175_s11, %s163_s13, %s1424_s29, %s1424_s29, %s1425_s6  }
  0x21   : > { %p183_p2 = pnand %p1257_p0, %p182_p1 }
  0x23   : > { %186 = sbr.rel (%p183_p2) target bundleno = 662 (0x296), region = 36 }
  0x28   : > { %s1538_s7 = sand.u32 1, %s1414_s16  }
  0x29   : > { %s1258_s8 = sshll.u32 %s1538_s7, 5  ;;  %s189_s10 = scalar_lea.sflag [#allocation3], %s1538_s7 }
  0x2a   : > { %s192_s14 = scalar_lea.vmem [#allocation2], %s1258_s8 }
  0x2b   : > { %1401 = dma.done.wait (%p1495_p6), %s189_s10, 512  }
  0x2c   : > { %1403 = vsyncadd (%p1495_p6), %s189_s10, 4294966784  ;;  %v1426_v0 = vmov 0   ;;  %v223_v1 = vld [vmem:[%s2089_s2 + $0x8] sm:$0xff]  ;;  %v222_v2 = vld [vmem:[%s2089_s2] sm:$0xff]  ;;  %vm322_vm0 = vcmask 130048   ;;  %vm483_vm1 = vcmask 123904  }
  0x2d   : > { %1325 = vset.pattern.permute.xlu1 %v1426_v0  ;;  %1324 = vset.pattern.permute.xlu0 %v1426_v0  ;;  %v239_v3 = vld [vmem:[%s2090_s3 + $0x8] sm:$0xff]  ;;  %v238_v4 = vld [vmem:[%s2090_s3] sm:$0xff]  ;;  %v220_v11 = vld [vmem:[%s192_s14 + $0x10] sm:$0xff]  ;;  %vm1061_vm2 = vcmask 1041409   ;;  %vm1063_vm3 = vcmask 1042434   ;;  %vm1065_vm4 = vcmask 1043459  }
  0x2e   : > { %231 = vperm.xlu1 %1325, %v223_v1   ;;  %226 = vperm.xlu0 %1324, %v222_v2   ;;  %v218_v7 = vld [vmem:[%s192_s14] sm:$0xff]  ;;  %v219_v8 = vld [vmem:[%s192_s14 + $0x8] sm:$0xff]  ;;  %v221_v12 = vld [vmem:[%s192_s14 + $0x18] sm:$0xff]  ;;  %vm1067_vm5 = vcmask 1044484   ;;  %vm1069_vm6 = vcmask 1045509   ;;  %vm1071_vm7 = vcmask 1046534  }
  0x2f   : > { %vm1073_vm8 = vcmask 1047559   ;;  %s1259_s5 = sshll.u32 %s1538_s7, 3  ;;  %s1270_s29 = sshll.u32 %s1473_s19, 3  ;;  %vm1163_vm9 = vcmask 523264  }
  0x30   : > { %s1176_s10 = scalar_lea.hbm %s2091_s4, %s1270_s29  ;;  %s217_s14 = scalar_lea.vmem [#allocation5], %s1259_s5 }
  0x31   : > { %s1178_s9 = sshll.u32 %s217_s14, 4  ;;  %s1180_s11 = sshll.u32 %s1176_s10, 4  ;;  %s1179_s9 = int_to_ptr.vmem [resolvable:$true] %s1178_s9  ;;  %s1181_s11 = int_to_ptr.hbm [resolvable:$true] %s1180_s11 }
  0x32   : > { %s1166_s12 = scalar_lea.sflag [#allocation4], %s1538_s7  ;;  %s1370_s13 = sshra.s32 %s1181_s11, 4  ;;  %s1371_s13 = int_to_ptr.hbm [resolvable:$true] %s1370_s13 }
  0x33   : > { %s1372_s20 = scalar_lea.hbm %s1371_s13, 8  ;;  %s1376_s23 = scalar_lea.hbm %s2091_s4, 16 }
  0x34   : > { %p1373_p6 = scmp.ne.s32.totalorder %s1371_s13, %s1372_s20  ;;  %p1377_p0 = scmp.lt.s32.totalorder %s1371_s13, %s2091_s4 }
  0x35   : > { %p1378_p1 = scmp.lt.s32.totalorder %s1376_s23, %s1372_s20 }
  0x36   : > { %247 = vperm.xlu1 %1325, %v239_v3   ;;  %242 = vperm.xlu0 %1324, %v238_v4   ;;  %p1374_p9 = pnand %p1373_p6, %p1502_p11 }
  0x37   : > { %p1379_p3 = por %p1378_p1, %p1377_p0 }
  0x38   : > { %p1375_p13 = pneg %p1374_p9 }
  0x3a   : > { %p1380_p4 = pnand %p1379_p3, %p1375_p13 }
  0xa0   : > { %v227_v5 = vpop.permute.xlu0 %226  ;;  %v232_v6 = vpop.permute.xlu1 %231 }
  0xa1   : > { %v234_v9 = vmul.f32 %v227_v5, %v218_v7  ;;  %v235_v10 = vmul.f32 %v227_v5, %v219_v8  ;;  %v236_v16 = vmul.f32 %v232_v6, %v220_v11  ;;  %v237_v17 = vmul.f32 %v232_v6, %v221_v12 }
  0xa8   : > { %v243_v13 = vpop.permute.xlu0 %242  ;;  %v248_v20 = vpop.permute.xlu1 %247 }
  0xa9   : > { %v250_v14 = vadd.f32 %v243_v13, %v234_v9  ;;  %v251_v15 = vadd.f32 %v243_v13, %v235_v10  ;;  %v252_v21 = vadd.f32 %v248_v20, %v236_v16  ;;  %v253_v22 = vadd.f32 %v248_v20, %v237_v17 }
  0xab   : > { %v254_v18 = vmax.f32 %v250_v14, 0.0  ;;  %v255_v19 = vmax.f32 %v251_v15, 0.0  ;;  %v256_v23 = vmax.f32 %v252_v21, 0.0  ;;  %v257_v24 = vmax.f32 %v253_v22, 0.0 }
  0xad   : > { %290 = vxpose.xlu2.b32.start [1/2] (short) %v255_v19, 128  ;;  %258 = vxpose.xlu0.b32.start [1/2] (short) %v254_v18, 128 }
  0xb5   : > { %291 = vxpose.xlu2.b32.end [2/2] (short) %v257_v24, 128  ;;  %259 = vxpose.xlu0.b32.end [2/2] (short) %v256_v23, 128 }
 0x146   : > { %v306_v25 = vpop.trf.xlu2 }
 0x147   : > { %v347_v29 = vsel %vm322_vm0, %v306_v25, 0.0 }
 0x14e   : > { %v307_v26 = vpop.trf.xlu2 }
 0x14f   : > { %v350_v49 = vsel %vm322_vm0, %v307_v26, 0.0 }
 0x151   : > { %v274_v27 = vpop.trf.xlu0 }
 0x152   : > { %v323_v61 = vsel %vm322_vm0, %v274_v27, 0.0 }
 0x156   : > { %v308_v28 = vpop.trf.xlu2 }
 0x157   : > { %v348_v30 = vsel %vm322_vm0, %v308_v28, 0.0 }
 0x158   : > { %v349_v31 = vadd.f32 %v348_v30, %v347_v29 }
 0x159   : > { %v275_v32 = vpop.trf.xlu0 }
 0x15a   : > { %v411_v33 = vrot.slane %v349_v31, 2  ;;  %v412_v34 = vrot.slane %v349_v31, 4  ;;  %v413_v35 = vrot.slane %v349_v31, 6  ;;  %v708_v36 = vsel %vm483_vm1, %v349_v31, 0.0 }
 0x15b   : > { %v709_v37 = vrot.slane %v708_v36, 4  ;;  %v326_v63 = vsel %vm322_vm0, %v275_v32, 0.0 }
 0x15c   : > { %v715_v38 = vsel %vm483_vm1, %v411_v33, 0.0  ;;  %v722_v39 = vsel %vm483_vm1, %v412_v34, 0.0  ;;  %v729_v40 = vsel %vm483_vm1, %v413_v35, 0.0 }
 0x15d   : > { %v710_v41 = vadd.f32 %v709_v37, %v708_v36  ;;  %v716_v42 = vrot.slane %v715_v38, 4  ;;  %v723_v43 = vrot.slane %v722_v39, 4  ;;  %v730_v44 = vrot.slane %v729_v40, 4 }
 0x15e   : > { %v309_v45 = vpop.trf.xlu2 }
 0x15f   : > { %v711_v46 = vrot.slane %v710_v41, 2  ;;  %v717_v47 = vadd.f32 %v716_v42, %v715_v38  ;;  %v351_v48 = vsel %vm322_vm0, %v309_v45, 0.0  ;;  %v724_v50 = vadd.f32 %v723_v43, %v722_v39 }
 0x160   : > { %v731_v51 = vadd.f32 %v730_v44, %v729_v40  ;;  %v352_v53 = vadd.f32 %v351_v48, %v350_v49 }
 0x161   : > { %v276_v52 = vpop.trf.xlu0  ;;  %v712_v54 = vadd.f32 %v711_v46, %v710_v41  ;;  %v718_v55 = vrot.slane %v717_v47, 2  ;;  %v725_v56 = vrot.slane %v724_v50, 2 }
 0x162   : > { %v732_v57 = vrot.slane %v731_v51, 2  ;;  %v736_v58 = vsel %vm483_vm1, %v352_v53, 0.0  ;;  %v324_v59 = vsel %vm322_vm0, %v276_v52, 0.0  ;;  %v414_v62 = vrot.slane %v352_v53, 2 }
 0x163   : > { %v737_v0 = vrot.slane %v736_v58, 4  ;;  %v325_v1 = vadd.f32 %v324_v59, %v323_v61  ;;  %v713_v2 = vrot.slane %v712_v54, 1  ;;  %v719_v3 = vadd.f32 %v718_v55, %v717_v47 }
 0x164   : > { %v726_v4 = vadd.f32 %v725_v56, %v724_v50  ;;  %v1572_v5 = vadd.f32 %v732_v57, %v731_v51  ;;  %v415_v7 = vrot.slane %v352_v53, 4  ;;  %v416_v8 = vrot.slane %v352_v53, 6 }
 0x165   : > { %v387_v9 = vrot.slane %v325_v1, 2  ;;  %v388_v10 = vrot.slane %v325_v1, 4  ;;  %v743_v11 = vsel %vm483_vm1, %v414_v62, 0.0  ;;  %v389_v12 = vrot.slane %v325_v1, 6 }
 0x166   : > { %v1568_v60 = vpop.trf.xlu2  ;;  %v484_v13 = vsel %vm483_vm1, %v325_v1, 0.0  ;;  %v738_v15 = vadd.f32 %v737_v0, %v736_v58  ;;  %v714_v23 = vadd.f32 %v713_v2, %v712_v54  ;;  %v720_v24 = vrot.slane %v719_v3, 1 }
 0x167   : > { %v485_v16 = vrot.slane %v484_v13, 4  ;;  %v491_v17 = vsel %vm483_vm1, %v387_v9, 0.0  ;;  %v498_v18 = vsel %vm483_vm1, %v388_v10, 0.0  ;;  %v505_v21 = vsel %vm483_vm1, %v389_v12, 0.0 }
 0x168   : > { %v492_v19 = vrot.slane %v491_v17, 4  ;;  %v499_v20 = vrot.slane %v498_v18, 4  ;;  %v506_v26 = vrot.slane %v505_v21, 4  ;;  %v727_v28 = vrot.slane %v726_v4, 1 }
 0x169   : > { %v277_v6 = vpop.trf.xlu0  ;;  %v486_v25 = vadd.f32 %v485_v16, %v484_v13  ;;  %v744_v32 = vrot.slane %v743_v11, 4  ;;  %v750_v33 = vsel %vm483_vm1, %v415_v7, 0.0  ;;  %v1584_v34 = vsel %vm483_vm1, %v416_v8, 0.0 }
 0x16a   : > { %v327_v14 = vsel %vm322_vm0, %v277_v6, 0.0  ;;  %v493_v29 = vadd.f32 %v492_v19, %v491_v17  ;;  %v500_v30 = vadd.f32 %v499_v20, %v498_v18  ;;  %v739_v36 = vrot.slane %v738_v15, 2 }
 0x16b   : > { %v328_v22 = vadd.f32 %v327_v14, %v326_v63  ;;  %v487_v35 = vrot.slane %v486_v25, 2  ;;  %v507_v37 = vadd.f32 %v506_v26, %v505_v21  ;;  %v734_v41 = vrot.slane %v1572_v5, 1 }
 0x16c   : > { %v494_v42 = vrot.slane %v493_v29, 2  ;;  %v501_v43 = vrot.slane %v500_v30, 2  ;;  %v721_v44 = vadd.f32 %v720_v24, %v719_v3  ;;  %v728_v45 = vadd.f32 %v727_v28, %v726_v4 }
 0x16d   : > { %v390_v31 = vrot.slane %v328_v22, 2  ;;  %v391_v38 = vrot.slane %v328_v22, 4  ;;  %v512_v39 = vsel %vm483_vm1, %v328_v22, 0.0  ;;  %v751_v46 = vrot.slane %v750_v33, 4 }
 0x16e   : > { %v1580_v27 = vpop.trf.xlu2  ;;  %v1591_v48 = vmul.f32 0.25, %v714_v23  ;;  %v488_v50 = vadd.f32 %v487_v35, %v486_v25  ;;  %v513_v51 = vrot.slane %v512_v39, 4  ;;  %v1594_v52 = vadd.f32 %v739_v36, %v738_v15 }
 0x16f   : > { %v519_v47 = vsel %vm483_vm1, %v390_v31, 0.0  ;;  %v1596_v53 = vadd.f32 %v744_v32, %v743_v11  ;;  %v508_v54 = vrot.slane %v507_v37, 2  ;;  %v526_v55 = vsel %vm483_vm1, %v391_v38, 0.0 }
 0x170   : > { %v495_v56 = vadd.f32 %v494_v42, %v493_v29  ;;  %v502_v57 = vadd.f32 %v501_v43, %v500_v30  ;;  %v392_v58 = vrot.slane %v328_v22, 6  ;;  %v520_v59 = vrot.slane %v519_v47, 4 }
 0x171   : > { %v1587_v40 = vpop.trf.xlu0  ;;  %v1599_v62 = vmul.f32 0.25, %v721_v44  ;;  %v1601_v63 = vmul.f32 0.25, %v728_v45  ;;  %v1603_v0 = vadd.f32 %v751_v46, %v750_v33  ;;  %v353_v1 = vsel %vm322_vm0, %v1568_v60, 0.0 }
 0x172   : > { %v489_v2 = vrot.slane %v488_v50, 1  ;;  %v514_v3 = vadd.f32 %v513_v51, %v512_v39  ;;  %v527_v4 = vrot.slane %v526_v55, 4  ;;  %v1610_v9 = vadd.f32 %v508_v54, %v507_v37 }
 0x173   : > { %v496_v12 = vrot.slane %v495_v56, 1  ;;  %v503_v13 = vrot.slane %v502_v57, 1  ;;  %v1614_v14 = vadd.f32 %v520_v59, %v519_v47  ;;  %v1617_v60 = vsel %vm483_vm1, %v392_v58, 0.0 }
 0x174   : > { %2117 = vst [vmem:[#allocation8_spill] sm:$0xff] %v1610_v9  ;;  %v1620_v19 = vadd.f32 %v489_v2, %v488_v50  ;;  %v515_v20 = vrot.slane %v514_v3, 2  ;;  %v1622_v21 = vadd.f32 %v527_v4, %v526_v55  ;;  %v356_v36 = vsel %vm322_vm0, %v1580_v27, 0.0 }
 0x175   : > { %2118 = vst [vmem:[#allocation9_spill] sm:$0xff] %v1614_v14  ;;  %v497_v44 = vadd.f32 %v496_v12, %v495_v56  ;;  %v504_v45 = vadd.f32 %v503_v13, %v502_v57  ;;  %v329_v2 = vsel %vm322_vm0, %v1587_v40, 0.0 }
 0x176   : > { %v312_v61 = vpop.trf.xlu2  ;;  %2119 = vst [vmem:[#allocation10_spill] sm:$0xff] %v1617_v60  ;;  %v1633_v46 = vadd.f32 %v515_v20, %v514_v3 }
 0x177   : > { %v354_v6 = vsel %vm322_vm0, %v312_v61, 0.0  ;;  %2120 = vst [vmem:[#allocation11_spill] sm:$0xff] %v1620_v19  ;;  %v1642_v13 = vmul.f32 0.25, %v497_v44 }
 0x178   : > { %v355_v10 = vadd.f32 %v354_v6, %v353_v1  ;;  %2121 = vst [vmem:[#allocation12_spill] sm:$0xff] %v1622_v21 }
 0x179   : > { %v1612_v11 = vpop.trf.xlu0  ;;  %2122 = vst [vmem:[#allocation13_spill] sm:$0xff] %v1633_v46 }
 0x17a   : > { %v417_v15 = vrot.slane %v355_v10, 2  ;;  %v418_v16 = vrot.slane %v355_v10, 4  ;;  %v419_v17 = vrot.slane %v355_v10, 6  ;;  %v764_v18 = vsel %vm483_vm1, %v355_v10, 0.0  ;;  %2123 = vst [vmem:[#allocation14_spill] sm:$0xff] %v1642_v13 }
 0x17b   : > { %v765_v22 = vrot.slane %v764_v18, 4 }
 0x17c   : > { %v771_v24 = vsel %vm483_vm1, %v417_v15, 0.0  ;;  %v778_v25 = vsel %vm483_vm1, %v418_v16, 0.0  ;;  %v785_v26 = vsel %vm483_vm1, %v419_v17, 0.0 }
 0x17d   : > { %v766_v28 = vadd.f32 %v765_v22, %v764_v18  ;;  %v772_v29 = vrot.slane %v771_v24, 4  ;;  %v779_v30 = vrot.slane %v778_v25, 4  ;;  %v786_v31 = vrot.slane %v785_v26, 4 }
 0x17e   : > { %v313_v32 = vpop.trf.xlu2 }
 0x17f   : > { %v357_v37 = vsel %vm322_vm0, %v313_v32, 0.0  ;;  %v767_v38 = vrot.slane %v766_v28, 2  ;;  %v773_v39 = vadd.f32 %v772_v29, %v771_v24  ;;  %v780_v42 = vadd.f32 %v779_v30, %v778_v25 }
 0x180   : > { %v787_v43 = vadd.f32 %v786_v31, %v785_v26  ;;  %v358_v47 = vadd.f32 %v357_v37, %v356_v36  ;;  %v1647_v25 = vmul.f32 0.25, %v504_v45  ;;  %v332_v32 = vsel %vm322_vm0, %v1612_v11, 0.0 }
 0x181   : > { %v280_v50 = vpop.trf.xlu0  ;;  %v768_v51 = vadd.f32 %v767_v38, %v766_v28  ;;  %v774_v54 = vrot.slane %v773_v39, 2  ;;  %v781_v55 = vrot.slane %v780_v42, 2 }
 0x182   : > { %v788_v58 = vrot.slane %v787_v43, 2  ;;  %v420_v59 = vrot.slane %v358_v47, 2  ;;  %v421_v61 = vrot.slane %v358_v47, 4  ;;  %v422_v1 = vrot.slane %v358_v47, 6  ;;  %2124 = vst [vmem:[#allocation15_spill] sm:$0xff] %v1647_v25 }
 0x183   : > { %v792_v27 = vsel %vm483_vm1, %v358_v47, 0.0  ;;  %v769_v4 = vrot.slane %v768_v51, 1  ;;  %v775_v6 = vadd.f32 %v774_v54, %v773_v39  ;;  %v782_v56 = vadd.f32 %v781_v55, %v780_v42 }
 0x184   : > { %v1638_v57 = vadd.f32 %v788_v58, %v787_v43  ;;  %v793_v3 = vrot.slane %v792_v27, 4  ;;  %v799_v10 = vsel %vm483_vm1, %v420_v59, 0.0  ;;  %v806_v12 = vsel %vm483_vm1, %v421_v61, 0.0 }
 0x185   : > { %v770_v15 = vadd.f32 %v769_v4, %v768_v51  ;;  %v776_v16 = vrot.slane %v775_v6, 1  ;;  %v783_v17 = vrot.slane %v782_v56, 1  ;;  %v800_v22 = vrot.slane %v799_v10, 4 }
 0x186   : > { %v314_v18 = vpop.trf.xlu2  ;;  %v794_v20 = vadd.f32 %v793_v3, %v792_v27  ;;  %v807_v24 = vrot.slane %v806_v12, 4  ;;  %v1645_v40 = vsel %vm483_vm1, %v422_v1, 0.0  ;;  %v330_v29 = vsel %vm322_vm0, %v280_v50, 0.0 }
 0x187   : > { %v777_v28 = vadd.f32 %v776_v16, %v775_v6  ;;  %v784_v30 = vadd.f32 %v783_v17, %v782_v56  ;;  %v790_v31 = vrot.slane %v1638_v57, 1  ;;  %v331_v36 = vadd.f32 %v330_v29, %v329_v2 }
 0x188   : > { %v1654_v38 = vmul.f32 0.25, %v770_v15  ;;  %v795_v39 = vrot.slane %v794_v20, 2  ;;  %v1658_v44 = vadd.f32 %v800_v22, %v799_v10  ;;  %v1660_v45 = vadd.f32 %v807_v24, %v806_v12 }
 0x189   : > { %v281_v37 = vpop.trf.xlu0  ;;  %v393_v47 = vrot.slane %v331_v36, 2  ;;  %v394_v50 = vrot.slane %v331_v36, 4  ;;  %v1662_v51 = vmul.f32 0.25, %v777_v28  ;;  %v395_v54 = vrot.slane %v331_v36, 6 }
 0x18a   : > { %v333_v43 = vsel %vm322_vm0, %v281_v37, 0.0  ;;  %v540_v11 = vsel %vm483_vm1, %v331_v36, 0.0  ;;  %v1665_v58 = vmul.f32 0.25, %v784_v30  ;;  %v796_v37 = vadd.f32 %v795_v39, %v794_v20 }
 0x18b   : > { %v334_v55 = vadd.f32 %v333_v43, %v332_v32  ;;  %v541_v59 = vrot.slane %v540_v11, 4  ;;  %v547_v61 = vsel %vm483_vm1, %v393_v47, 0.0  ;;  %v554_v1 = vsel %vm483_vm1, %v394_v50, 0.0 }
 0x18c   : > { %v548_v27 = vrot.slane %v547_v61, 4  ;;  %v555_v2 = vrot.slane %v554_v1, 4  ;;  %v561_v4 = vsel %vm483_vm1, %v395_v54, 0.0  ;;  %v359_v20 = vsel %vm322_vm0, %v314_v18, 0.0 }
 0x18d   : > { %v396_v6 = vrot.slane %v334_v55, 2  ;;  %v542_v3 = vadd.f32 %v541_v59, %v540_v11  ;;  %v562_v10 = vrot.slane %v561_v4, 4  ;;  %v397_v12 = vrot.slane %v334_v55, 4 }
 0x18e   : > { %v315_v56 = vpop.trf.xlu2  ;;  %v398_v15 = vrot.slane %v334_v55, 6  ;;  %v549_v16 = vadd.f32 %v548_v27, %v547_v61  ;;  %v556_v17 = vadd.f32 %v555_v2, %v554_v1  ;;  %v568_v22 = vsel %vm483_vm1, %v334_v55, 0.0 }
 0x18f   : > { %v575_v24 = vsel %vm483_vm1, %v396_v6, 0.0  ;;  %v543_v28 = vrot.slane %v542_v3, 2  ;;  %v563_v29 = vadd.f32 %v562_v10, %v561_v4  ;;  %v569_v30 = vrot.slane %v568_v22, 4 }
 0x190   : > { %v576_v32 = vrot.slane %v575_v24, 4  ;;  %v550_v43 = vrot.slane %v549_v16, 2  ;;  %v557_v47 = vrot.slane %v556_v17, 2  ;;  %v582_v50 = vsel %vm483_vm1, %v397_v12, 0.0 }
 0x191   : > { %v282_v36 = vpop.trf.xlu0  ;;  %v544_v54 = vadd.f32 %v543_v28, %v542_v3  ;;  %v564_v11 = vrot.slane %v563_v29, 2  ;;  %v570_v59 = vadd.f32 %v569_v30, %v568_v22  ;;  %v583_v55 = vrot.slane %v582_v50, 4 }
 0x192   : > { %v1673_v35 = vadd.f32 %v576_v32, %v575_v24  ;;  %v551_v61 = vadd.f32 %v550_v43, %v549_v16  ;;  %v558_v1 = vadd.f32 %v557_v47, %v556_v17  ;;  %v1676_v27 = vsel %vm483_vm1, %v398_v15, 0.0 }
 0x193   : > { %2126 = vst [vmem:[#allocation17_spill] sm:$0xff] %v1676_v27  ;;  %v545_v2 = vrot.slane %v544_v54, 1  ;;  %v1678_v4 = vadd.f32 %v564_v11, %v563_v29  ;;  %v571_v39 = vrot.slane %v570_v59, 2  ;;  %v797_v6 = vrot.slane %v796_v37, 1 }
 0x194   : > { %2125 = vst [vmem:[#allocation16_spill] sm:$0xff] %v1673_v35  ;;  %v802_v10 = vrot.slane %v1658_v44, 2  ;;  %v552_v3 = vrot.slane %v551_v61, 1  ;;  %v559_v12 = vrot.slane %v558_v1, 1  ;;  %v1686_v29 = vadd.f32 %v583_v55, %v582_v50 }
 0x195   : > { %2127 = vst [vmem:[#allocation18_spill] sm:$0xff] %v1678_v4  ;;  %v546_v24 = vadd.f32 %v545_v2, %v544_v54  ;;  %v1682_v28 = vadd.f32 %v571_v39, %v570_v59  ;;  %v362_v43 = vsel %vm322_vm0, %v315_v56, 0.0  ;;  %v1692_v47 = vsel %vm322_vm0, %v282_v36, 0.0 }
 0x196   : > { %v316_v22 = vpop.trf.xlu2  ;;  %v553_v17 = vadd.f32 %v552_v3, %v551_v61  ;;  %v560_v30 = vadd.f32 %v559_v12, %v558_v1  ;;  %2129 = vst [vmem:[#allocation20_spill] sm:$0xff] %v1686_v29  ;;  %v1702_v50 = vadd.f32 %v790_v31, %v1638_v57  ;;  %v809_v12 = vrot.slane %v1660_v45, 2 }
 0x197   : > { %2128 = vst [vmem:[#allocation19_spill] sm:$0xff] %v1682_v28  ;;  %v360_v18 = vsel %vm322_vm0, %v316_v22, 0.0  ;;  %v1694_v59 = vmul.f32 0.25, %v546_v24  ;;  %v803_v31 = vadd.f32 %v802_v10, %v1658_v44  ;;  %v1716_v23 = vadd.f32 %v797_v6, %v796_v37 }
 0x198   : > { %v361_v54 = vadd.f32 %v360_v18, %v359_v20  ;;  %v1696_v2 = vmul.f32 0.25, %v553_v17  ;;  %v1705_v36 = vmul.f32 0.25, %v560_v30  ;;  %v1719_v15 = vadd.f32 %v809_v12, %v1660_v45 }
 0x199   : > { %v283_v11 = vpop.trf.xlu0  ;;  %2130 = vst [vmem:[#allocation21_spill] sm:$0xff] %v1694_v59 }
 0x19a   : > { %2131 = vst [vmem:[#allocation22_spill] sm:$0xff] %v1696_v2  ;;  %v423_v1 = vrot.slane %v361_v54, 2  ;;  %v424_v55 = vrot.slane %v361_v54, 4  ;;  %v425_v39 = vrot.slane %v361_v54, 6  ;;  %v820_v56 = vsel %vm483_vm1, %v361_v54, 0.0 }
 0x19b   : > { %2132 = vst [vmem:[#allocation23_spill] sm:$0xff] %v1705_v36  ;;  %v821_v20 = vrot.slane %v820_v56, 4  ;;  %v1708_v3 = vsel %vm322_vm0, %v283_v11, 0.0  ;;  %v804_v11 = vrot.slane %v803_v31, 1 }
 0x19c   : > { %v827_v22 = vsel %vm483_vm1, %v423_v1, 0.0  ;;  %v834_v24 = vsel %vm483_vm1, %v424_v55, 0.0  ;;  %v841_v57 = vsel %vm483_vm1, %v425_v39, 0.0 }
 0x19d   : > { %v822_v17 = vadd.f32 %v821_v20, %v820_v56  ;;  %v828_v18 = vrot.slane %v827_v22, 4  ;;  %v835_v33 = vrot.slane %v834_v24, 4  ;;  %v842_v54 = vrot.slane %v841_v57, 4 }
 0x19e   : > { %v317_v30 = vpop.trf.xlu2  ;;  %v1721_v44 = vadd.f32 %v804_v11, %v803_v31  ;;  %v1727_v56 = vadd.f32 %v734_v41, %v1572_v5 }
 0x19f   : > { %v363_v26 = vsel %vm322_vm0, %v317_v30, 0.0  ;;  %v823_v1 = vrot.slane %v822_v17, 2  ;;  %v829_v16 = vadd.f32 %v828_v18, %v827_v22  ;;  %v836_v55 = vadd.f32 %v835_v33, %v834_v24 }
 0x1a0   : > { %v843_v61 = vadd.f32 %v842_v54, %v841_v57  ;;  %v364_v39 = vadd.f32 %v363_v26, %v362_v43 }
 0x1a1   : > { %v284_v32 = vpop.trf.xlu0  ;;  %v824_v37 = vadd.f32 %v823_v1, %v822_v17  ;;  %v830_v6 = vrot.slane %v829_v16, 2  ;;  %v837_v20 = vrot.slane %v836_v55, 2 }
 0x1a2   : > { %v844_v45 = vrot.slane %v843_v61, 2  ;;  %v426_v12 = vrot.slane %v364_v39, 2  ;;  %v427_v30 = vrot.slane %v364_v39, 4  ;;  %v428_v22 = vrot.slane %v364_v39, 6 }
 0x1a3   : > { %v848_v33 = vsel %vm483_vm1, %v364_v39, 0.0  ;;  %v825_v26 = vrot.slane %v824_v37, 1  ;;  %v831_v43 = vadd.f32 %v830_v6, %v829_v16  ;;  %v838_v24 = vadd.f32 %v837_v20, %v836_v55 }
 0x1a4   : > { %v845_v57 = vadd.f32 %v844_v45, %v843_v61  ;;  %v849_v31 = vrot.slane %v848_v33, 4  ;;  %v855_v18 = vsel %vm483_vm1, %v426_v12, 0.0  ;;  %v862_v54 = vsel %vm483_vm1, %v427_v30, 0.0 }
 0x1a5   : > { %v1733_v5 = vsel %vm483_vm1, %v428_v22, 0.0  ;;  %v826_v41 = vadd.f32 %v825_v26, %v824_v37  ;;  %v832_v17 = vrot.slane %v831_v43, 1  ;;  %v839_v11 = vrot.slane %v838_v24, 1 }
 0x1a6   : > { %v846_v1 = vrot.slane %v845_v57, 1  ;;  %v318_v49 = vpop.trf.xlu2  ;;  %v850_v8 = vadd.f32 %v849_v31, %v848_v33  ;;  %v856_v7 = vrot.slane %v855_v18, 4  ;;  %v863_v39 = vrot.slane %v862_v54, 4 }
 0x1a7   : > { %v833_v55 = vadd.f32 %v832_v17, %v831_v43  ;;  %v840_v61 = vadd.f32 %v839_v11, %v838_v24  ;;  %v1736_v6 = vmul.f32 0.25, %v826_v41  ;;  %v336_v20 = vsel %vm322_vm0, %v284_v32, 0.0 }
 0x1a8   : > { %v851_v45 = vrot.slane %v850_v8, 2  ;;  %v1739_v12 = vadd.f32 %v856_v7, %v855_v18  ;;  %v1741_v30 = vadd.f32 %v863_v39, %v862_v54  ;;  %v337_v37 = vadd.f32 %v336_v20, %v1692_v47 }
 0x1a9   : > { %v285_v22 = vpop.trf.xlu0  ;;  %v1744_v26 = vmul.f32 0.25, %v833_v55  ;;  %v1746_v33 = vmul.f32 0.25, %v840_v61  ;;  %v1749_v31 = vsel %vm322_vm0, %v318_v49, 0.0  ;;  %v1755_v17 = vadd.f32 %v846_v1, %v845_v57 }
 0x1aa   : > { %v339_v43 = vsel %vm322_vm0, %v285_v22, 0.0  ;;  %v852_v24 = vadd.f32 %v851_v45, %v850_v8  ;;  %v858_v32 = vrot.slane %v1739_v12, 2  ;;  %v399_v41 = vrot.slane %v337_v37, 2 }
 0x1ab   : > { %v400_v7 = vrot.slane %v337_v37, 4  ;;  %v401_v18 = vrot.slane %v337_v37, 6  ;;  %v596_v54 = vsel %vm483_vm1, %v337_v37, 0.0  ;;  %v340_v47 = vadd.f32 %v339_v43, %v1708_v3 }
 0x1ac   : > { %v853_v11 = vrot.slane %v852_v24, 1  ;;  %v597_v39 = vrot.slane %v596_v54, 4  ;;  %v603_v55 = vsel %vm483_vm1, %v399_v41, 0.0 }
 0x1ad   : > { %v610_v49 = vsel %vm483_vm1, %v400_v7, 0.0  ;;  %v604_v61 = vrot.slane %v603_v55, 4  ;;  %v617_v8 = vsel %vm483_vm1, %v401_v18, 0.0  ;;  %v402_v45 = vrot.slane %v340_v47, 2 }
 0x1ae   : > { %v611_v20 = vrot.slane %v610_v49, 4  ;;  %v319_v22 = vpop.trf.xlu2  ;;  %v598_v42 = vadd.f32 %v597_v39, %v596_v54  ;;  %v618_v10 = vrot.slane %v617_v8, 4  ;;  %v403_v16 = vrot.slane %v340_v47, 4 }
 0x1af   : > { %v404_v37 = vrot.slane %v340_v47, 6  ;;  %v605_v25 = vadd.f32 %v604_v61, %v603_v55  ;;  %v624_v57 = vsel %vm483_vm1, %v340_v47, 0.0  ;;  %v631_v1 = vsel %vm483_vm1, %v402_v45, 0.0 }
 0x1b0   : > { %v612_v3 = vadd.f32 %v611_v20, %v610_v49  ;;  %v599_v43 = vrot.slane %v598_v42, 2  ;;  %v619_v41 = vadd.f32 %v618_v10, %v617_v8  ;;  %v625_v13 = vrot.slane %v624_v57, 4 }
 0x1b1   : > { %v632_v7 = vrot.slane %v631_v1, 4  ;;  %v286_v19 = vpop.trf.xlu0  ;;  %v606_v60 = vrot.slane %v605_v25, 2  ;;  %v638_v18 = vsel %vm483_vm1, %v403_v16, 0.0  ;;  %v1764_v54 = vsel %vm483_vm1, %v404_v37, 0.0 }
 0x1b2   : > { %v613_v21 = vrot.slane %v612_v3, 2  ;;  %2133 = vst [vmem:[#allocation24_spill] sm:$0xff] %v1764_v54  ;;  %v600_v39 = vadd.f32 %v599_v43, %v598_v42  ;;  %v620_v14 = vrot.slane %v619_v41, 2  ;;  %v626_v55 = vadd.f32 %v625_v13, %v624_v57 }
 0x1b3   : > { %v1766_v49 = vadd.f32 %v632_v7, %v631_v1  ;;  %v607_v47 = vadd.f32 %v606_v60, %v605_v25  ;;  %v639_v20 = vrot.slane %v638_v18, 4  ;;  %v368_v42 = vsel %vm322_vm0, %v319_v22, 0.0 }
 0x1b4   : > { %v614_v61 = vadd.f32 %v613_v21, %v612_v3  ;;  %v601_v8 = vrot.slane %v600_v39, 1  ;;  %v1769_v45 = vadd.f32 %v620_v14, %v619_v41  ;;  %v627_v46 = vrot.slane %v626_v55, 2 }
 0x1b5   : > { %v608_v16 = vrot.slane %v607_v47, 1  ;;  %v1772_v37 = vadd.f32 %v639_v20, %v638_v18  ;;  %v1779_v25 = vsel %vm322_vm0, %v286_v19, 0.0  ;;  %v854_v43 = vadd.f32 %v853_v11, %v852_v24 }
 0x1b6   : > { %v615_v9 = vrot.slane %v614_v61, 1  ;;  %v320_v13 = vpop.trf.xlu2  ;;  %v602_v57 = vadd.f32 %v601_v8, %v600_v39  ;;  %v1776_v21 = vadd.f32 %v627_v46, %v626_v55  ;;  %v859_v39 = vadd.f32 %v858_v32, %v1739_v12 }
 0x1b7   : > { %v609_v14 = vadd.f32 %v608_v16, %v607_v47  ;;  %v366_v1 = vsel %vm322_vm0, %v320_v13, 0.0  ;;  %v2137_v12 = vrot.slane %v1733_v5, 4 }
 0x1b8   : > { %v616_v3 = vadd.f32 %v615_v9, %v614_v61  ;;  %v1782_v41 = vmul.f32 0.25, %v602_v57  ;;  %v367_v22 = vadd.f32 %v366_v1, %v1749_v31  ;;  %v865_v9 = vrot.slane %v1741_v30, 2 }
 0x1b9   : > { %v287_v18 = vpop.trf.xlu0  ;;  %v1787_v20 = vmul.f32 0.25, %v609_v14  ;;  %v860_v8 = vrot.slane %v859_v39, 1  ;;  %v871_v32 = vadd.f32 %v2137_v12, %v1733_v5  ;;  %v1804_v14 = vmul.f32 0.25, %v1755_v17 }
 0x1ba   : > { %2134 = vst [vmem:[#allocation25_spill] sm:$0xff] %v1782_v41  ;;  %v1789_v46 = vmul.f32 0.25, %v616_v3  ;;  %v1792_v19 = vsel %vm322_vm0, %v287_v18, 0.0  ;;  %v429_v55 = vrot.slane %v367_v22, 2  ;;  %v430_v24 = vrot.slane %v367_v22, 4 }
 0x1bb   : > { %2135 = vst [vmem:[#allocation26_spill] sm:$0xff] %v1787_v20  ;;  %v431_v11 = vrot.slane %v367_v22, 6  ;;  %v876_v47 = vsel %vm483_vm1, %v367_v22, 0.0  ;;  %v866_v31 = vadd.f32 %v865_v9, %v1741_v30  ;;  %v1807_v9 = vadd.f32 %v860_v8, %v859_v39 }
 0x1bc   : > { %2136 = vst [vmem:[#allocation27_spill] sm:$0xff] %v1789_v46  ;;  %v877_v61 = vrot.slane %v876_v47, 4  ;;  %v883_v16 = vsel %vm483_vm1, %v429_v55, 0.0  ;;  %v890_v13 = vsel %vm483_vm1, %v430_v24, 0.0  ;;  %v872_v5 = vrot.slane %v871_v32, 2 }
 0x1bd   : > { %v897_v57 = vsel %vm483_vm1, %v431_v11, 0.0  ;;  %v884_v1 = vrot.slane %v883_v16, 4  ;;  %v891_v22 = vrot.slane %v890_v13, 4  ;;  %v867_v36 = vrot.slane %v866_v31, 1 }
 0x1be   : > { %v878_v3 = vadd.f32 %v877_v61, %v876_v47  ;;  %v898_v18 = vrot.slane %v897_v57, 4  ;;  %v321_v10 = vpop.trf.xlu2  ;;  %v1813_v47 = vadd.f32 %v872_v5, %v871_v32  ;;  %v1815_v61 = vmul.f32 0.25, %v854_v43 }
 0x1bf   : > { %v369_v30 = vsel %vm322_vm0, %v321_v10, 0.0  ;;  %v885_v55 = vadd.f32 %v884_v1, %v883_v16  ;;  %v892_v7 = vadd.f32 %v891_v22, %v890_v13  ;;  %v1811_v17 = vadd.f32 %v867_v36, %v866_v31 }
 0x1c0   : > { %v879_v12 = vrot.slane %v878_v3, 2  ;;  %v899_v24 = vadd.f32 %v898_v18, %v897_v57  ;;  %v1809_v60 = vadd.f32 %v369_v30, %v368_v42 }
 0x1c1   : > { %v288_v11 = vpop.trf.xlu0  ;;  %v886_v59 = vrot.slane %v885_v55, 2  ;;  %v893_v10 = vrot.slane %v892_v7, 2 }
 0x1c2   : > { %v880_v2 = vadd.f32 %v879_v12, %v878_v3  ;;  %v900_v39 = vrot.slane %v899_v24, 2  ;;  %v432_v8 = vrot.slane %v1809_v60, 2  ;;  %v433_v27 = vrot.slane %v1809_v60, 4 }
 0x1c3   : > { %v904_v42 = vsel %vm483_vm1, %v1809_v60, 0.0  ;;  %v887_v36 = vadd.f32 %v886_v59, %v885_v55  ;;  %v894_v31 = vadd.f32 %v893_v10, %v892_v7  ;;  %v342_v1 = vsel %vm322_vm0, %v288_v11, 0.0 }
 0x1c4   : > { %v881_v13 = vrot.slane %v880_v2, 1  ;;  %v901_v32 = vadd.f32 %v900_v39, %v899_v24  ;;  %v905_v57 = vrot.slane %v904_v42, 4  ;;  %v911_v43 = vsel %vm483_vm1, %v432_v8, 0.0 }
 0x1c5   : > { %v1824_v3 = vsel %vm483_vm1, %v433_v27, 0.0  ;;  %v888_v18 = vrot.slane %v887_v36, 1  ;;  %v895_v30 = vrot.slane %v894_v31, 1  ;;  %v912_v5 = vrot.slane %v911_v43, 4 }
 0x1c6   : > { %v882_v22 = vadd.f32 %v881_v13, %v880_v2  ;;  %v906_v12 = vadd.f32 %v905_v57, %v904_v42  ;;  %v343_v29 = vadd.f32 %v342_v1, %v1779_v25  ;;  %v902_v59 = vrot.slane %v901_v32, 1 }
 0x1c7   : > { %v889_v7 = vadd.f32 %v888_v18, %v887_v36  ;;  %v1829_v55 = vadd.f32 %v895_v30, %v894_v31  ;;  %v1833_v10 = vadd.f32 %v912_v5, %v911_v43 }
 0x1c8   : > { %v1831_v24 = vmul.f32 0.25, %v882_v22  ;;  %v907_v27 = vrot.slane %v906_v12, 2  ;;  %v405_v39 = vrot.slane %v343_v29, 2  ;;  %v406_v11 = vrot.slane %v343_v29, 4 }
 0x1c9   : > { %v407_v2 = vrot.slane %v343_v29, 6  ;;  %v289_v8 = vpop.trf.xlu0  ;;  %v1835_v13 = vmul.f32 0.25, %v889_v7  ;;  %v652_v42 = vsel %vm483_vm1, %v343_v29, 0.0  ;;  %v1839_v25 = vadd.f32 %v902_v59, %v901_v32 }
 0x1ca   : > { %v345_v57 = vsel %vm322_vm0, %v289_v8, 0.0  ;;  %v908_v36 = vadd.f32 %v907_v27, %v906_v12  ;;  %v653_v31 = vrot.slane %v652_v42, 4  ;;  %v659_v1 = vsel %vm483_vm1, %v405_v39, 0.0 }
 0x1cb   : > { %v666_v43 = vsel %vm483_vm1, %v406_v11, 0.0  ;;  %v660_v22 = vrot.slane %v659_v1, 4  ;;  %v673_v30 = vsel %vm483_vm1, %v407_v2, 0.0  ;;  %v346_v5 = vadd.f32 %v345_v57, %v1792_v19 }
 0x1cc   : > { %v667_v18 = vrot.slane %v666_v43, 4  ;;  %v654_v7 = vadd.f32 %v653_v31, %v652_v42  ;;  %v674_v16 = vrot.slane %v673_v30, 4  ;;  %v909_v35 = vrot.slane %v908_v36, 1 }
 0x1cd   : > { %v914_v29 = vrot.slane %v1833_v10, 2  ;;  %v661_v8 = vadd.f32 %v660_v22, %v659_v1  ;;  %v408_v59 = vrot.slane %v346_v5, 2  ;;  %v409_v12 = vrot.slane %v346_v5, 4 }
 0x1ce   : > { %v668_v32 = vadd.f32 %v667_v18, %v666_v43  ;;  %v655_v27 = vrot.slane %v654_v7, 2  ;;  %v675_v28 = vadd.f32 %v674_v16, %v673_v30  ;;  %v410_v39 = vrot.slane %v346_v5, 6 }
 0x1cf   : > { %v680_v11 = vsel %vm483_vm1, %v346_v5, 0.0  ;;  %v662_v4 = vrot.slane %v661_v8, 2  ;;  %v687_v2 = vsel %vm483_vm1, %v408_v59, 0.0  ;;  %v694_v31 = vsel %vm483_vm1, %v409_v12, 0.0 }
 0x1d0   : > { %v669_v46 = vrot.slane %v668_v32, 2  ;;  %v681_v20 = vrot.slane %v680_v11, 4  ;;  %v656_v19 = vadd.f32 %v655_v27, %v654_v7  ;;  %v676_v42 = vrot.slane %v675_v28, 2 }
 0x1d1   : > { %v688_v57 = vrot.slane %v687_v2, 4  ;;  %v663_v1 = vadd.f32 %v662_v4, %v661_v8  ;;  %v695_v18 = vrot.slane %v694_v31, 4  ;;  %v1854_v41 = vsel %vm483_vm1, %v410_v39, 0.0 }
 0x1d2   : > { %v670_v43 = vadd.f32 %v669_v46, %v668_v32  ;;  %v682_v22 = vadd.f32 %v681_v20, %v680_v11  ;;  %v657_v16 = vrot.slane %v656_v19, 1  ;;  %v1849_v30 = vadd.f32 %v676_v42, %v675_v28 }
 0x1d3   : > { %v1851_v5 = vadd.f32 %v688_v57, %v687_v2  ;;  %v664_v7 = vrot.slane %v663_v1, 1  ;;  %v1856_v54 = vadd.f32 %v695_v18, %v694_v31  ;;  %v702_v28 = vrot.slane %v1854_v41, 4 }
 0x1d4   : > { %v671_v59 = vrot.slane %v670_v43, 1  ;;  %v683_v27 = vrot.slane %v682_v22, 2  ;;  %v658_v4 = vadd.f32 %v657_v16, %v656_v19  ;;  %v678_v20 = vrot.slane %v1849_v30, 1 }
 0x1d5   : > { %v690_v46 = vrot.slane %v1851_v5, 2  ;;  %v665_v8 = vadd.f32 %v664_v7, %v663_v1  ;;  %v910_v39 = vadd.f32 %v909_v35, %v908_v36  ;;  %v915_v2 = vadd.f32 %v914_v29, %v1833_v10 }
 0x1d6   : > { %v672_v32 = vadd.f32 %v671_v59, %v670_v43  ;;  %v1861_v12 = vadd.f32 %v683_v27, %v682_v22  ;;  %v1863_v11 = vmul.f32 0.25, %v658_v4  ;;  %v2138_v42 = vrot.slane %v1824_v3, 4 }
 0x1d7   : > { %v2139_v57 = vrot.slane %v1809_v60, 6  ;;  %v1872_v18 = vmul.f32 0.25, %v665_v8  ;;  %v916_v36 = vrot.slane %v915_v2, 1  ;;  %v990_v16 = vmul.f32 0.25, %v1829_v55 }
 0x1d8   : > { %v920_v19 = vadd.f32 %v2138_v42, %v1824_v3  ;;  %v1874_v1 = vmul.f32 0.25, %v672_v32  ;;  %v685_v43 = vrot.slane %v1861_v12, 1  ;;  %v991_v10 = vmul.f32 0.25, %v1839_v25 }
 0x1d9   : > { %v925_v31 = vsel %vm483_vm1, %v2139_v57, 0.0  ;;  %v992_v3 = vmul.f32 0.25, %v910_v39  ;;  %v1117_v60 = vsel %vm1061_vm2, %v1835_v13, %v1831_v24  ;;  %v874_v7 = vrot.slane %v1813_v47, 1 }
 0x1da   : > { %v926_v35 = vrot.slane %v925_v31, 4  ;;  %v921_v22 = vrot.slane %v920_v19, 2  ;;  %v917_v59 = vadd.f32 %v916_v36, %v915_v2  ;;  %v1118_v4 = vsel %vm1063_vm3, %v990_v16, %v1117_v60 }
 0x1db   : > { %v985_v8 = vmul.f32 0.25, %v1807_v9  ;;  %v1119_v55 = vsel %vm1065_vm4, %v991_v10, %v1118_v4  ;;  %v875_v25 = vadd.f32 %v874_v7, %v1813_v47  ;;  %v986_v39 = vmul.f32 0.25, %v1811_v17 }
 0x1dc   : > { %v927_v29 = vadd.f32 %v926_v35, %v925_v31  ;;  %v922_v27 = vadd.f32 %v921_v22, %v920_v19  ;;  %v993_v57 = vmul.f32 0.25, %v917_v59  ;;  %v1120_v31 = vsel %vm1067_vm5, %v992_v3, %v1119_v55 }
 0x1dd   : > { %v1110_v24 = vsel %vm1061_vm2, %v1744_v26, %v1736_v6  ;;  %v987_v2 = vmul.f32 0.25, %v875_v25  ;;  %v2140_v19 = vrot.slane %v1719_v15, 1  ;;  %v2141_v22 = vrot.slane %v1645_v40, 4 }
 0x1de   : > { %v928_v32 = vrot.slane %v927_v29, 2  ;;  %v923_v42 = vrot.slane %v922_v27, 1  ;;  %v1111_v9 = vsel %vm1063_vm3, %v1746_v33, %v1110_v24  ;;  %v1121_v17 = vsel %vm1069_vm6, %v993_v57, %v1120_v31 }
 0x1df   : > { %v812_v35 = vadd.f32 %v2140_v19, %v1719_v15  ;;  %v1112_v36 = vsel %vm1065_vm4, %v1804_v14, %v1111_v9  ;;  %v815_v16 = vadd.f32 %v2141_v22, %v1645_v40  ;;  %v975_v33 = vmul.f32 0.25, %v1702_v50 }
 0x1e0   : > { %v929_v13 = vadd.f32 %v928_v32, %v927_v29  ;;  %v924_v47 = vadd.f32 %v923_v42, %v922_v27  ;;  %v1113_v26 = vsel %vm1067_vm5, %v1815_v61, %v1112_v36  ;;  %v976_v10 = vmul.f32 0.25, %v1716_v23 }
 0x1e1   : > { %v1114_v15 = vsel %vm1069_vm6, %v985_v8, %v1113_v26  ;;  %v816_v3 = vrot.slane %v815_v16, 2  ;;  %v977_v60 = vmul.f32 0.25, %v1721_v44  ;;  %v978_v59 = vmul.f32 0.25, %v812_v35 }
 0x1e2   : > { %v930_v6 = vrot.slane %v929_v13, 1  ;;  %v994_v29 = vmul.f32 0.25, %v924_v47  ;;  %v1115_v14 = vsel %vm1071_vm7, %v986_v39, %v1114_v15  ;;  %v1103_v40 = vsel %vm1061_vm2, %v1662_v51, %v1654_v38 }
 0x1e3   : > { %v1116_v50 = vsel %vm1073_vm8, %v987_v2, %v1115_v14  ;;  %v817_v27 = vadd.f32 %v816_v3, %v815_v16  ;;  %v1104_v23 = vsel %vm1063_vm3, %v1665_v58, %v1103_v40  ;;  %v2142_v44 = vrot.slane %v1594_v52, 1 }
 0x1e4   : > { %v931_v7 = vadd.f32 %v930_v6, %v929_v13  ;;  %v1122_v61 = vsel %vm1071_vm7, %v994_v29, %v1121_v17  ;;  %v1105_v8 = vsel %vm1065_vm4, %v975_v33, %v1104_v23  ;;  %v2143_v55 = vrot.slane %v1596_v53, 2 }
 0x1e5   : > { %v742_v32 = vadd.f32 %v2142_v44, %v1594_v52  ;;  %v818_v38 = vrot.slane %v817_v27, 1  ;;  %v1106_v51 = vsel %vm1067_vm5, %v976_v10, %v1105_v8  ;;  %v753_v39 = vrot.slane %v1603_v0, 2 }
 0x1e6   : > { %v995_v4 = vmul.f32 0.25, %v931_v7  ;;  %v747_v25 = vadd.f32 %v2143_v55, %v1596_v53  ;;  %v2144_v42 = vrot.slane %v1584_v34, 4  ;;  %v1107_v31 = vsel %vm1069_vm6, %v977_v60, %v1106_v51 }
 0x1e7   : > { %v967_v52 = vmul.f32 0.25, %v1727_v56  ;;  %v819_v13 = vadd.f32 %v818_v38, %v817_v27  ;;  %v1108_v53 = vsel %vm1071_vm7, %v978_v59, %v1107_v31  ;;  %v754_v2 = vadd.f32 %v753_v39, %v1603_v0  ;;  %v2148_v38 = vld [vmem:[#allocation24_spill] sm:$0xff] }
 0x1e8   : > { %v759_v58 = vadd.f32 %v2144_v42, %v1584_v34  ;;  %v1123_v57 = vsel %vm1073_vm8, %v995_v4, %v1122_v61  ;;  %v748_v24 = vrot.slane %v747_v25, 1  ;;  %v968_v35 = vmul.f32 0.25, %v742_v32 }
 0x1e9   : > { %1260 = vmatpush.xpose.msk.msra.mxu0 %vm322_vm0, %v1123_v57  ;;  %v1096_v34 = vsel %vm1061_vm2, %v1599_v62, %v1591_v48  ;;  %v679_v47 = vadd.f32 %v678_v20, %v1849_v30  ;;  %v979_v17 = vmul.f32 0.25, %v819_v13  ;;  %v755_v56 = vrot.slane %v754_v2, 1 }
 0x1ea   : > { %v760_v9 = vrot.slane %v759_v58, 2  ;;  %v749_v19 = vadd.f32 %v748_v24, %v747_v25  ;;  %v1097_v22 = vsel %vm1063_vm3, %v1601_v63, %v1096_v34  ;;  %v686_v6 = vadd.f32 %v685_v43, %v1861_v12  ;;  %v2151_v24 = vld [vmem:[#allocation26_spill] sm:$0xff] }
 0x1eb   : > { %v1098_v0 = vsel %vm1065_vm4, %v967_v52, %v1097_v22  ;;  %v691_v48 = vadd.f32 %v690_v46, %v1851_v5  ;;  %v1109_v62 = vsel %vm1073_vm8, %v979_v17, %v1108_v53  ;;  %v756_v30 = vadd.f32 %v755_v56, %v754_v2  ;;  %v2152_v2 = vld [vmem:[#allocation27_spill] sm:$0xff] }
 0x1ec   : > { %v761_v36 = vadd.f32 %v760_v9, %v759_v58  ;;  %v969_v16 = vmul.f32 0.25, %v749_v19  ;;  %v1099_v26 = vsel %vm1067_vm5, %v968_v35, %v1098_v0  ;;  %v697_v10 = vrot.slane %v1856_v54, 2  ;;  %v2153_v19 = vld [vmem:[#allocation18_spill] sm:$0xff]  ;;  %v2155_v0 = vld [vmem:[#allocation19_spill] sm:$0xff] }
 0x1ed   : > { %1261 = vmatpush.xpose.msk.msra.mxu0 %vm322_vm0, %v1116_v50  ;;  %v692_v33 = vrot.slane %v691_v48, 1  ;;  %v703_v12 = vadd.f32 %v702_v28, %v1854_v41  ;;  %v970_v29 = vmul.f32 0.25, %v756_v30  ;;  %v959_v5 = vmul.f32 0.25, %v679_v47 }
 0x1ee   : > { %v762_v20 = vrot.slane %v761_v36, 1  ;;  %v1100_v63 = vsel %vm1069_vm6, %v969_v16, %v1099_v26  ;;  %v960_v46 = vmul.f32 0.25, %v686_v6  ;;  %v698_v3 = vadd.f32 %v697_v10, %v1856_v54 }
 0x1ef   : > { %v693_v15 = vadd.f32 %v692_v33, %v691_v48  ;;  %v704_v60 = vrot.slane %v703_v12, 2  ;;  %v1089_v7 = vsel %vm1061_vm2, %v1872_v18, %v1863_v11  ;;  %v1101_v59 = vsel %vm1071_vm7, %v970_v29, %v1100_v63  ;;  %v2159_v33 = vld [vmem:[#allocation20_spill] sm:$0xff]  ;;  %v2160_v29 = vld [vmem:[#allocation17_spill] sm:$0xff] }
 0x1f0   : > { %v763_v43 = vadd.f32 %v762_v20, %v761_v36  ;;  %v1090_v41 = vsel %vm1063_vm3, %v1874_v1, %v1089_v7  ;;  %v2145_v28 = vrot.slane %v1769_v45, 1  ;;  %v699_v61 = vrot.slane %v698_v3, 1  ;;  %v2157_v20 = vld [vmem:[#allocation16_spill] sm:$0xff] }
 0x1f1   : > { %1262 = vmatpush.xpose.msk.msra.mxu0 %vm322_vm0, %v1109_v62  ;;  %v705_v50 = vadd.f32 %v704_v60, %v703_v12  ;;  %v961_v54 = vmul.f32 0.25, %v693_v15  ;;  %v1091_v27 = vsel %vm1065_vm4, %v959_v5, %v1090_v41  ;;  %v2146_v18 = vrot.slane %v1776_v21, 1 }
 0x1f2   : > { %v971_v14 = vmul.f32 0.25, %v763_v43  ;;  %v623_v40 = vadd.f32 %v2145_v28, %v1769_v45  ;;  %v1092_v11 = vsel %vm1067_vm5, %v960_v46, %v1091_v27  ;;  %v2147_v1 = vrot.slane %v1766_v49, 2  ;;  %v2162_v28 = vld [vmem:[#allocation21_spill] sm:$0xff] }
 0x1f3   : > { %v630_v4 = vadd.f32 %v2146_v18, %v1776_v21  ;;  %v700_v44 = vadd.f32 %v699_v61, %v698_v3  ;;  %v706_v32 = vrot.slane %v705_v50, 1  ;;  %v1093_v45 = vsel %vm1069_vm6, %v961_v54, %v1092_v11 }
 0x1f4   : > { %v1102_v23 = vsel %vm1073_vm8, %v971_v14, %v1101_v59  ;;  %v635_v8 = vadd.f32 %v2147_v1, %v1766_v49  ;;  %v641_v55 = vrot.slane %v1772_v37, 2  ;;  %v2149_v51 = vrot.slane %v2148_v38, 4  ;;  %v2150_v49 = vld [vmem:[#allocation25_spill] sm:$0xff] }
 0x1f5   : > { %1263 = vmatpush.xpose.msk.msra.mxu0 %vm322_vm0, %v1102_v23  ;;  %v951_v42 = vmul.f32 0.25, %v623_v40  ;;  %v952_v58 = vmul.f32 0.25, %v630_v4  ;;  %v707_v21 = vadd.f32 %v706_v32, %v705_v50  ;;  %v962_v57 = vmul.f32 0.25, %v700_v44  ;;  %v2163_v40 = vld [vmem:[#allocation22_spill] sm:$0xff]  ;;  %v2164_v50 = vld [vmem:[#allocation8_spill] sm:$0xff]  ;;  %v2166_v4 = vld [vmem:[#allocation23_spill] sm:$0xff] }
 0x1f6   : > { %v636_v25 = vrot.slane %v635_v8, 1  ;;  %v647_v39 = vadd.f32 %v2149_v51, %v2148_v38  ;;  %v642_v31 = vadd.f32 %v641_v55, %v1772_v37  ;;  %v1082_v52 = vsel %vm1061_vm2, %v2151_v24, %v2150_v49  ;;  %v2171_v49 = vld [vmem:[#allocation12_spill] sm:$0xff] }
 0x1f7   : > { %v1083_v9 = vsel %vm1063_vm3, %v2152_v2, %v1082_v52  ;;  %v2154_v35 = vrot.slane %v2153_v19, 1  ;;  %v963_v47 = vmul.f32 0.25, %v707_v21  ;;  %v1094_v17 = vsel %vm1071_vm7, %v962_v57, %v1093_v45  ;;  %v2167_v45 = vld [vmem:[#allocation13_spill] sm:$0xff]  ;;  %v2172_v52 = vld [vmem:[#allocation10_spill] sm:$0xff]  ;;  %v2174_v2 = vld [vmem:[#allocation11_spill] sm:$0xff] }
 0x1f8   : > { %v637_v13 = vadd.f32 %v636_v25, %v635_v8  ;;  %v648_v53 = vrot.slane %v647_v39, 2  ;;  %v643_v56 = vrot.slane %v642_v31, 1  ;;  %v1084_v36 = vsel %vm1065_vm4, %v951_v42, %v1083_v9  ;;  %v2169_v42 = vld [vmem:[#allocation9_spill] sm:$0xff] }
 0x1f9   : > { %v567_v34 = vadd.f32 %v2154_v35, %v2153_v19  ;;  %v1085_v16 = vsel %vm1067_vm5, %v952_v58, %v1084_v36  ;;  %v2156_v6 = vrot.slane %v2155_v0, 1  ;;  %v1095_v62 = vsel %vm1073_vm8, %v963_v47, %v1094_v17 }
 0x1fa   : > { %v649_v37 = vadd.f32 %v648_v53, %v647_v39  ;;  %v953_v22 = vmul.f32 0.25, %v637_v13  ;;  %v644_v30 = vadd.f32 %v643_v56, %v642_v31  ;;  %v2158_v26 = vrot.slane %v2157_v20, 2  ;;  %1264 = vmatpush.xpose.msk.msra.mxu0 %vm322_vm0, %v1095_v62 }
 0x1fb   : > { %v574_v48 = vadd.f32 %v2156_v6, %v2155_v0  ;;  %v585_v10 = vrot.slane %v2159_v33, 2  ;;  %v2161_v5 = vrot.slane %v2160_v29, 4  ;;  %v943_v15 = vmul.f32 0.25, %v567_v34  ;;  %v2175_v0 = vld [vmem:[#allocation14_spill] sm:$0xff] }
 0x1fc   : > { %v579_v63 = vadd.f32 %v2158_v26, %v2157_v20  ;;  %v650_v12 = vrot.slane %v649_v37, 1  ;;  %v1086_v43 = vsel %vm1069_vm6, %v953_v22, %v1085_v16  ;;  %v954_v3 = vmul.f32 0.25, %v644_v30  ;;  %v2176_v20 = vld [vmem:[#allocation15_spill] sm:$0xff] }
 0x1fd   : > { %v591_v46 = vadd.f32 %v2161_v5, %v2160_v29  ;;  %v586_v7 = vadd.f32 %v585_v10, %v2159_v33  ;;  %v944_v14 = vmul.f32 0.25, %v574_v48  ;;  %v1075_v61 = vsel %vm1061_vm2, %v2163_v40, %v2162_v28 }
 0x1fe   : > { %v580_v60 = vrot.slane %v579_v63, 1  ;;  %v651_v59 = vadd.f32 %v650_v12, %v649_v37  ;;  %v2165_v54 = vrot.slane %v2164_v50, 1  ;;  %v1087_v23 = vsel %vm1071_vm7, %v954_v3, %v1086_v43 }
 0x1ff   : > { %v592_v41 = vrot.slane %v591_v46, 2  ;;  %v587_v18 = vrot.slane %v586_v7, 1  ;;  %v1076_v1 = vsel %vm1063_vm3, %v2166_v4, %v1075_v61  ;;  %v2168_v55 = vrot.slane %v2167_v45, 1 }
 0x200   : > { %v511_v27 = vadd.f32 %v2165_v54, %v2164_v50  ;;  %v581_v11 = vadd.f32 %v580_v60, %v579_v63  ;;  %v955_v8 = vmul.f32 0.25, %v651_v59  ;;  %v1077_v32 = vsel %vm1065_vm4, %v943_v15, %v1076_v1 }
 0x201   : > { %v593_v44 = vadd.f32 %v592_v41, %v591_v46  ;;  %v518_v25 = vadd.f32 %v2168_v55, %v2167_v45  ;;  %v588_v38 = vadd.f32 %v587_v18, %v586_v7  ;;  %v1078_v39 = vsel %vm1067_vm5, %v944_v14, %v1077_v32  ;;  %v996_v14 = vld [vmem:[%s2088_s1] sm:$0xff] }
 0x202   : > { %v945_v51 = vmul.f32 0.25, %v581_v11  ;;  %v2170_v58 = vrot.slane %v2169_v42, 2  ;;  %v1088_v57 = vsel %vm1073_vm8, %v955_v8, %v1087_v23  ;;  %v529_v24 = vrot.slane %v2171_v49, 2 }
 0x203   : > { %v594_v31 = vrot.slane %v593_v44, 1  ;;  %v2173_v13 = vrot.slane %v2172_v52, 4  ;;  %v932_v9 = vmul.f32 0.25, %v2174_v2  ;;  %1265 = vmatpush.xpose.msk.msra.mxu0 %vm322_vm0, %v1088_v57  ;;  %v946_v19 = vmul.f32 0.25, %v588_v38 }
 0x204   : > { %v523_v21 = vadd.f32 %v2170_v58, %v2169_v42  ;;  %v1079_v35 = vsel %vm1069_vm6, %v945_v51, %v1078_v39  ;;  %v530_v17 = vadd.f32 %v529_v24, %v2171_v49  ;;  %v936_v36 = vmul.f32 0.25, %v518_v25 }
 0x205   : > { %v535_v53 = vadd.f32 %v2173_v13, %v2172_v52  ;;  %v595_v47 = vadd.f32 %v594_v31, %v593_v44  ;;  %v1080_v37 = vsel %vm1071_vm7, %v946_v19, %v1079_v35  ;;  %v935_v16 = vmul.f32 0.25, %v511_v27 }
 0x206   : > { %v524_v34 = vrot.slane %v523_v21, 1  ;;  %v1062_v6 = vsel %vm1061_vm2, %v2175_v0, %v932_v9  ;;  %v531_v62 = vrot.slane %v530_v17, 1 }
 0x207   : > { %v536_v56 = vrot.slane %v535_v53, 2  ;;  %v947_v48 = vmul.f32 0.25, %v595_v47  ;;  %v1064_v26 = vsel %vm1063_vm3, %v2176_v20, %v1062_v6 }
 0x208   : > { %v525_v22 = vadd.f32 %v524_v34, %v523_v21  ;;  %v1066_v33 = vsel %vm1065_vm4, %v935_v16, %v1064_v26  ;;  %v532_v12 = vadd.f32 %v531_v62, %v530_v17 }
 0x209   : > { %v537_v30 = vadd.f32 %v536_v56, %v535_v53  ;;  %v1081_v10 = vsel %vm1073_vm8, %v947_v48, %v1080_v37  ;;  %v1068_v29 = vsel %vm1067_vm5, %v936_v36, %v1066_v33 }
 0x20a   : > { %v937_v63 = vmul.f32 0.25, %v525_v22  ;;  %1266 = vmatpush.xpose.msk.msra.mxu0 %vm322_vm0, %v1081_v10  ;;  %v938_v15 = vmul.f32 0.25, %v532_v12 }
 0x20b   : > { %v538_v43 = vrot.slane %v537_v30, 1 }
 0x20c   : > { %v1070_v5 = vsel %vm1069_vm6, %v937_v63, %v1068_v29 }
 0x20d   : > { %v539_v46 = vadd.f32 %v538_v43, %v537_v30  ;;  %v1072_v60 = vsel %vm1071_vm7, %v938_v15, %v1070_v5 }
 0x20f   : > { %v939_v3 = vmul.f32 0.25, %v539_v46 }
 0x211   : > { %v1074_v7 = vsel %vm1073_vm8, %v939_v3, %v1072_v60 }
 0x212   : > { %1267 = vmatpush.xpose.msk.msra.mxu0 %vm322_vm0, %v1074_v7 }
 0x215   : > { %1268 = vmatmul.msk.f32.vlgmr.msra.gmra.mxu0 %vm322_vm0, %v996_v14 }
 0x292   : > { %v1160_v59 = vpop.f32.mrf.mxu0 }
 0x293   : > { %1164 = vst.msk [vmem:[%s217_s14] sm:$0xff] %vm1163_vm9, %v1160_v59 }
 0x294   : > { %1383 = shalt.err (!%p1380_p4)
}
 0x295   : > { %1276 = dma.vmem_to_hbm [thread:$0]  (%p1502_p11), %s1179_s9, 128, %s1181_s11, %s1166_s12  }
 0x296 PF: > { %s1192_s7 = sand.u32 1, %s1410_s15   ;;  %p2177_p7 = scmp.ge.s32.totalorder %s1422_s18, 2 }
 0x297   : > { %s1193_s30 = scalar_lea.sflag [#allocation4], %s1192_s7 }
 0x298   : > { %p1283_p5 = pnand %p2177_p7, %p1506_p12 }
 0x29a   : > { %p1284_p8 = pneg %p1283_p5 }
 0x29c   : > { %1405 = dma.done.wait (%p1284_p8), %s1193_s30, 128  }
 0x29d   : > { %1407 = vsyncadd (%p1284_p8), %s1193_s30, 4294967168  ;;  %p17_p10 = scmp.ge.s32.totalorder %s1477_s21, 4   ;;  %s2178_s15 = smov %s1414_s16 }
 0x29e   : > { %s2179_s16 = smov %s1418_s17  ;;  %s2180_s17 = smov %s1489_s24 }
 0x29f   : > { %s2181_s18 = smov %s1477_s21  ;;  %19 = sbr.rel (!%p17_p10) target bundleno = 5 (0x5), region = 81 }
 0x2a4   :  { %1199 = vsyncpa [#allocation3], 1 }
 0x2a5   :  { %1201 = vsyncpa [#allocation3 + $0x1], 1 }
 0x2a6   :  { %1202 = vsyncpa [#allocation4], 1 }
 0x2a7   :  { %1204 = vsyncpa [#allocation4 + $0x1], 1 }

</bundles_post_ra>
